<compile_context>
chip_gen: v6e
topology: v6e:2x2x1
jax: 0.10.0
libtpu: 0.0.40
codegen_flags: <defaults>
</compile_context>

<pallas_src>
import functools

import jax
import jax.numpy as jnp
from jax.experimental import pallas as pl
from jax.experimental.pallas import tpu as pltpu


def _normallayer_kernel(x_ref, gamma_ref, beta_ref, o_ref, *, eps, d_model):
    x = x_ref[...].astype(jnp.float32)            # (rt, D)
    gamma = gamma_ref[...].astype(jnp.float32)    # (1, D)
    beta = beta_ref[...].astype(jnp.float32)      # (1, D)

    n = jnp.float32(d_model)
    denom = jnp.float32(max(d_model - 1, 1))      # unbiased; guard d_model == 1

    # One-pass moments: the two cross-lane reductions are independent.
    s = jnp.sum(x, axis=-1, keepdims=True)        # (rt, 1)
    sq = jnp.sum(x * x, axis=-1, keepdims=True)   # (rt, 1)
    mean = s * (1.0 / n)
    var = jnp.maximum((sq - n * mean * mean) / denom, 0.0)
    std = jnp.sqrt(var)

    # Per-row reciprocal (EUP path); approx=False to stay within 1e-5 tol.
    inv = pl.reciprocal(std + eps, approx=False)  # (rt, 1)

    o_ref[...] = (gamma * (x - mean) * inv + beta).astype(o_ref.dtype)


def _round_up(v, m):
    return (v + m - 1) // m * m


def _round_down(v, m):
    return max(m, (v // m) * m)


def normallayer_forward(x, gamma, beta, eps=1e-6):
    orig_shape = x.shape
    d_model = orig_shape[-1]
    x2 = x.reshape(-1, d_model)
    n_rows = x2.shape[0]

    itemsize = jnp.dtype(x.dtype).itemsize
    # Sublane alignment: 8 rows for 32-bit dtypes, 16 for bf16/fp16, 32 for int8/fp8.
    sublane = max(8, 32 // max(itemsize, 1))

    # VMEM budget per grid step: 2x double-buffered in + out in native dtype
    # plus roughly three f32-sized intermediates.
    budget_bytes = 16 * 1024 * 1024
    per_row_bytes = d_model * (4 * itemsize + 12)
    rt = budget_bytes // max(per_row_bytes, 1)
    rt = max(sublane, min(rt, 1024))
    rt = _round_down(rt, sublane)

    # Don't exceed the (padded) row count.
    rt = min(rt, _round_up(n_rows, sublane))
    rt = _round_down(rt, sublane)
    # Prefer >=2 grid steps so the row axis can shard across TensorCores.
    if n_rows >= 2 * sublane and _round_up(n_rows, rt) // rt < 2:
        rt = _round_down(_round_up(n_rows, 2 * sublane) // 2, sublane)
    rt = max(rt, sublane)

    n_rows_p = _round_up(n_rows, rt)
    if n_rows_p != n_rows:
        x2 = jnp.pad(x2, ((0, n_rows_p - n_rows), (0, 0)))

    gamma2 = gamma.reshape(1, d_model)
    beta2 = beta.reshape(1, d_model)

    kernel = functools.partial(_normallayer_kernel, eps=eps, d_model=d_model)

    out = pl.pallas_call(
        kernel,
        out_shape=jax.ShapeDtypeStruct((n_rows_p, d_model), x.dtype),
        grid_spec=pltpu.PrefetchScalarGridSpec(
            num_scalar_prefetch=0,
            grid=(n_rows_p // rt,),
            in_specs=[
                pl.BlockSpec((rt, d_model), lambda i: (i, 0)),
                pl.BlockSpec((1, d_model), lambda i: (0, 0)),
                pl.BlockSpec((1, d_model), lambda i: (0, 0)),
            ],
            out_specs=pl.BlockSpec((rt, d_model), lambda i: (i, 0)),
        ),
        compiler_params=pltpu.CompilerParams(
            dimension_semantics=("parallel",),
            vmem_limit_bytes=32 * 1024 * 1024,
        ),
    )(x2, gamma2, beta2)

    if n_rows_p != n_rows:
        out = out[:n_rows]
    return out.reshape(orig_shape)


if __name__ == "__main__":
    key = jax.random.PRNGKey(0)
    batch, seq, d_model = 2, 8, 32

    x = jax.random.normal(key, (batch, seq, d_model), dtype=jnp.float32)
    # nn.Parameter(torch.ones(d_model)) / nn.Parameter(torch.zeros(d_model))
    gamma = jnp.ones((d_model,), dtype=jnp.float32)
    beta = jnp.zeros((d_model,), dtype=jnp.float32)

    out = normallayer_forward(x, gamma, beta, eps=1e-6)
    out = jax.block_until_ready(out)

    # Reference in plain JAX (unbiased std, eps added to std).
    mean = jnp.mean(x, axis=-1, keepdims=True)
    std = jnp.sqrt(jnp.sum((x - mean) ** 2, axis=-1, keepdims=True) / (d_model - 1))
    ref = gamma * (x - mean) / (std + 1e-6) + beta
    assert jnp.allclose(out, ref, atol=1e-5, rtol=1e-5), "mismatch vs reference"

    print("KERNEL_OK")
</pallas_src>

<mosaic_0001>
module attributes {stable_mosaic.version = 11 : i64} {
  func.func @_normallayer_kernel(%arg0: i32, %arg1: memref<8x32xf32, #tpu.memory_space<vmem>>, %arg2: memref<1x32xf32, #tpu.memory_space<vmem>>, %arg3: memref<1x32xf32, #tpu.memory_space<vmem>>, %arg4: memref<8x32xf32, #tpu.memory_space<vmem>>) attributes {dimension_semantics = [#tpu.dimension_semantics<parallel>], iteration_bounds = array<i64: 2>, scalar_prefetch = 0 : i64, scratch_operands = 0 : i64, tpu.core_type = #tpu.core_type<tc>, window_params = [{transform_indices = @transform_0, window_bounds = array<i64: 8, 32>}, {pipeline_mode = #tpu.pipeline_mode<synchronous>, transform_indices = @transform_1, window_bounds = array<i64: 1, 32>}, {pipeline_mode = #tpu.pipeline_mode<synchronous>, transform_indices = @transform_2, window_bounds = array<i64: 1, 32>}, {transform_indices = @transform_3, window_bounds = array<i64: 8, 32>}]} {
    %c0 = arith.constant 0 : index
    %c0_0 = arith.constant 0 : index
    %0 = vector.load %arg1[%c0, %c0_0] : memref<8x32xf32, #tpu.memory_space<vmem>>, vector<8x32xf32>
    %c0_1 = arith.constant 0 : index
    %c0_2 = arith.constant 0 : index
    %1 = vector.load %arg2[%c0_1, %c0_2] : memref<1x32xf32, #tpu.memory_space<vmem>>, vector<1x32xf32>
    %c0_3 = arith.constant 0 : index
    %c0_4 = arith.constant 0 : index
    %2 = vector.load %arg3[%c0_3, %c0_4] : memref<1x32xf32, #tpu.memory_space<vmem>>, vector<1x32xf32>
    %cst = arith.constant dense<0.000000e+00> : vector<8xf32>
    %3 = vector.multi_reduction <add>, %0, %cst [1] : vector<8x32xf32> to vector<8xf32>
    %4 = vector.shape_cast %3 : vector<8xf32> to vector<8x1xf32>
    %5 = arith.mulf %0, %0 : vector<8x32xf32>
    %cst_5 = arith.constant dense<0.000000e+00> : vector<8xf32>
    %6 = vector.multi_reduction <add>, %5, %cst_5 [1] : vector<8x32xf32> to vector<8xf32>
    %7 = vector.shape_cast %6 : vector<8xf32> to vector<8x1xf32>
    %cst_6 = arith.constant 1.000000e+00 : f32
    %cst_7 = arith.constant 3.200000e+01 : f32
    %8 = arith.divf %cst_6, %cst_7 : f32
    %9 = vector.broadcast %8 : f32 to vector<8x1xf32>
    %10 = arith.mulf %4, %9 : vector<8x1xf32>
    %cst_8 = arith.constant 3.200000e+01 : f32
    %11 = vector.broadcast %cst_8 : f32 to vector<8x1xf32>
    %12 = arith.mulf %11, %10 : vector<8x1xf32>
    %13 = arith.mulf %12, %10 : vector<8x1xf32>
    %14 = arith.subf %7, %13 : vector<8x1xf32>
    %cst_9 = arith.constant 3.100000e+01 : f32
    %15 = vector.broadcast %cst_9 : f32 to vector<8x1xf32>
    %16 = arith.divf %14, %15 : vector<8x1xf32>
    %cst_10 = arith.constant 0.000000e+00 : f32
    %17 = vector.broadcast %cst_10 : f32 to vector<8x1xf32>
    %18 = arith.maximumf %16, %17 : vector<8x1xf32>
    %19 = math.sqrt %18 : vector<8x1xf32>
    %cst_11 = arith.constant 9.99999997E-7 : f32
    %20 = vector.broadcast %cst_11 : f32 to vector<8x1xf32>
    %21 = arith.addf %19, %20 : vector<8x1xf32>
    %22 = tpu.reciprocal %21 : vector<8x1xf32> -> vector<8x1xf32>
    %23 = vector.broadcast %10 : vector<8x1xf32> to vector<8x32xf32>
    %24 = arith.subf %0, %23 : vector<8x32xf32>
    %25 = vector.broadcast %1 : vector<1x32xf32> to vector<8x32xf32>
    %26 = arith.mulf %25, %24 : vector<8x32xf32>
    %27 = vector.broadcast %22 : vector<8x1xf32> to vector<8x32xf32>
    %28 = arith.mulf %26, %27 : vector<8x32xf32>
    %29 = vector.broadcast %2 : vector<1x32xf32> to vector<8x32xf32>
    %30 = arith.addf %28, %29 : vector<8x32xf32>
    %c0_12 = arith.constant 0 : index
    %c0_13 = arith.constant 0 : index
    %31 = vector.load %arg4[%c0_12, %c0_13] : memref<8x32xf32, #tpu.memory_space<vmem>>, vector<8x32xf32>
    tpu.vector_store %arg4[%c0_12, %c0_13], %30 {strides = array<i32>} : memref<8x32xf32, #tpu.memory_space<vmem>>, vector<8x32xf32>,
    return
  }
  func.func @transform_0(%arg0: i32) -> (i32, i32) {
    %c0_i32 = arith.constant 0 : i32
    %c0_i32_0 = arith.constant 0 : i32
    return %arg0, %c0_i32 : i32, i32
  }
  func.func @transform_1(%arg0: i32) -> (i32, i32) {
    %c0_i32 = arith.constant 0 : i32
    %c0_i32_0 = arith.constant 0 : i32
    %c0_i32_1 = arith.constant 0 : i32
    return %c0_i32, %c0_i32_0 : i32, i32
  }
  func.func @transform_2(%arg0: i32) -> (i32, i32) {
    %c0_i32 = arith.constant 0 : i32
    %c0_i32_0 = arith.constant 0 : i32
    %c0_i32_1 = arith.constant 0 : i32
    return %c0_i32, %c0_i32_0 : i32, i32
  }
  func.func @transform_3(%arg0: i32) -> (i32, i32) {
    %c0_i32 = arith.constant 0 : i32
    %c0_i32_0 = arith.constant 0 : i32
    return %arg0, %c0_i32 : i32, i32
  }
}

</mosaic_0001>

<bundles_post_ra>
// kernel: tpu_custom_call.1
= control target key start
LH: loop header
LB: loop body
LE: loop exit
PB: predicated region body
PF: predicated region fallthrough
CT: control target
= control target key end

     0   :  { %8 = vsyncpa [#allocation3], 0  ;;  %s648_s0 = inlined_call_operand.hbm [shape: f32[16,32], index: 0, kind: input, shape index: {}]   ;;  %s649_s1 = inlined_call_operand.vmem [shape: f32[1,32], index: 1, kind: input, shape index: {}]   ;;  %s650_s2 = inlined_call_operand.vmem [shape: f32[1,32], index: 2, kind: input, shape index: {}]   ;;  %s651_s3 = inlined_call_operand.hbm [shape: f32[16,32], index: 3, kind: output, shape index: {}]  }
   0x1   :  { %10 = vsyncpa [#allocation3 + $0x1], 0 }
   0x2   :  { %11 = vsyncpa [#allocation4], 0 }
   0x3   :  { %13 = vsyncpa [#allocation4 + $0x1], 0  ;;  %s494_s12 = smov 0   ;;  %s496_s13 = smov 0  }
   0x4   :  { %s498_s14 = smov 0   ;;  %s500_s15 = smov 0  }
   0x5 LB: > { %s515_s16 = sadd.s32 4294967295, %s470_s15   ;;  %s314_s17 = sadd.s32 4294967294, %s470_s15   ;;  %s470_s15 = sphi %s500_s15, %s668_s15   ;;  %s466_s14 = sphi %s498_s14, %s667_s14   ;;  %s462_s13 = sphi %s496_s13, %s666_s13   ;;  %s458_s12 = sphi %s494_s12, %s665_s12  }
   0x6   : > { %s519_s18 = sadd.s32 1, %s470_s15   ;;  %s26_s19 = sadd.s32 1, %s466_s14 }
   0x7   : > { %s23_s20 = ssub.s32 %s470_s15, %s519_s18  ;;  %p33_p0 = scmp.ne.s32.totalorder %s466_s14, %s462_s13 }
   0x8   : > { %p24_p1 = scmp.eq.s32.totalorder %s23_s20, 0  ;;  %p34_p2 = scmp.eq.s32.totalorder %s470_s15, 0 }
   0x9   : > { %p39_p3 = scmp.ne.s32.totalorder %s462_s13, %s458_s12  ;;  %p40_p4 = scmp.eq.s32.totalorder %s515_s16, 0 }
   0xa   : > { %s531_s21 = scalar_select %p24_p1, %s466_s14, %s26_s19  }
   0xb   : > { %p533_p5 = por %p34_p2, %p33_p0  ;;  %p537_p6 = por %p40_p4, %p39_p3 }
   0xc   : > { %p105_p7 = scmp.eq.s32.totalorder %s515_s16, 1  ;;  %p111_p8 = scmp.eq.s32.totalorder %s314_s17, 1 }
   0xd   : > { %s655_s23 = scalar_select %p537_p6, 1, 0 }
   0xe   : > { %p340_p10 = scmp.lt.s32.totalorder %s470_s15, 2  ;;  %p544_p11 = por %p105_p7, %p33_p0 }
   0xf   : > { %p548_p12 = por %p111_p8, %p39_p3  ;;  %s137_s26 = sand.u32 1, %s466_s14  }
  0x10   : > { %s656_s24 = scalar_select %p544_p11, 1, 0 }
  0x11   : > { %s657_s25 = scalar_select %p548_p12, 1, 0 }
  0x12   : > { %s318_s27 = sshll.u32 %s470_s15, 7  ;;  %s317_s28 = sshll.u32 %s137_s26, 3 }
  0x13   : > { %s557_s4 = scalar_lea.hbm %s648_s0, %s318_s27  ;;  %s141_s5 = scalar_lea.vmem [#allocation2], %s317_s28 }
  0x14   : > { %s148_s6 = sshll.u32 %s141_s5, 4  ;;  %p561_p13 = pnand %p340_p10, %p533_p5  ;;  %s565_s6 = int_to_ptr.vmem [resolvable:$true] %s148_s6 }
  0x15   : > { %s138_s8 = scalar_lea.sflag [#allocation3], %s137_s26  ;;  %s378_s9 = scalar_lea.hbm %s557_s4, 128 }
  0x16   : > { %p379_p2 = scmp.ne.s32.totalorder %s557_s4, %s378_s9  ;;  %p380_p3 = pneg %p561_p13 }
  0x17   : > { %s383_s17 = scalar_lea.hbm %s648_s0, 256  ;;  %p384_p5 = scmp.lt.s32.totalorder %s557_s4, %s648_s0 }
  0x18   : > { %p381_p4 = pnand %p380_p3, %p379_p2  ;;  %p385_p8 = scmp.lt.s32.totalorder %s383_s17, %s378_s9 }
  0x1a   : > { %p382_p7 = pneg %p381_p4  ;;  %p386_p10 = por %p385_p8, %p384_p5 }
  0x1c   : > { %p387_p9 = pnand %p386_p10, %p382_p7 }
  0x1e   : > { %390 = shalt.err (!%p387_p9)
}
  0x1f   : > { %s391_s22 = scalar_lea.vmem %s565_s6, 128  ;;  %s472_s26 = smov [#allocation2]  }
  0x20   : > { %p392_p0 = scmp.ne.s32.totalorder %s565_s6, %s391_s22  ;;  %s396_s27 = sshll.u32 %s472_s26, 4  ;;  %s397_s27 = int_to_ptr.vmem [resolvable:$false] %s396_s27 }
  0x21   : > { %s398_s28 = scalar_lea.vmem %s397_s27, 256  ;;  %p399_p4 = scmp.lt.s32.totalorder %s565_s6, %s397_s27 }
  0x22   : > { %p394_p1 = pnand %p392_p0, %p380_p3  ;;  %p400_p12 = scmp.lt.s32.totalorder %s398_s28, %s391_s22 }
  0x24   : > { %p395_p2 = pneg %p394_p1  ;;  %p401_p11 = por %p400_p12, %p399_p4 }
  0x26   : > { %p402_p6 = pnand %p401_p11, %p395_p2 }
  0x28   : > { %405 = shalt.err (!%p402_p6)
}
  0x29   : > { %335 = dma.hbm_to_vmem [thread:$0]  (!%p561_p13), %s557_s4, 128, %s565_s6, %s138_s8  }
  0x2a   : > { %p659_p9 = scmp.lt.s32.totalorder %s470_s15, 3  ;;  %p660_p7 = scmp.ge.s32.totalorder %s470_s15, 1 }
  0x2c   : > { %p154_p0 = pnand %p660_p7, %p659_p9 }
  0x2d   : > { %s592_s29 = sand.u32 (!%p154_p0), 1, %s462_s13   ;;  %p661_p6 = scmp.ne.s32.totalorder (!%p154_p0), %s655_s23, 0 }
  0x2e   : > { %157 = sbr.rel (%p154_p0) target bundleno = 255 (0xff), region = 32  ;;  %s320_s30 = sshll.u32 (!%p154_p0), %s592_s29, 3 }
  0x2f   : > { %s160_s5 = scalar_lea.sflag (!%p154_p0), [#allocation3], %s592_s29  ;;  %s163_s7 = scalar_lea.vmem (!%p154_p0), [#allocation2], %s320_s30 }
  0x33   : > { %449 = dma.done.wait (%p661_p6), %s160_s5, 128  }
  0x34   : > { %451 = vsyncadd (%p661_p6), %s160_s5, 4294967168  ;;  %vm189_vm0 = vcmask 261120   ;;  %v186_v0 = vld [vmem:[%s163_s7] sm:$0xff]  ;;  %s325_s9 = sshll.u32 %s515_s16, 7  ;;  %s185_s10 = scalar_lea.vmem [#allocation5], %s320_s30 }
  0x35   : > { %v190_v1 = vsel %vm189_vm0, %v186_v0, 0.0  ;;  %v193_v2 = vmul.f32 %v186_v0, %v186_v0  ;;  %v322_v19 = vld [vmem:[%s649_s1] ss:$0 sm:$0xff]  ;;  %s244_s11 = sshll.u32 %s185_s10, 4  ;;  %s242_s20 = scalar_lea.hbm %s651_s3, %s325_s9  ;;  %s245_s11 = int_to_ptr.vmem [resolvable:$true] %s244_s11 }
  0x36   : > { %191 = vadd.xlane.f32.xlu0 %v190_v1  ;;  %v323_v22 = vld [vmem:[%s650_s2] ss:$0 sm:$0xff]  ;;  %s231_s22 = scalar_lea.sflag [#allocation4], %s592_s29  ;;  %s406_s26 = scalar_lea.vmem %s245_s11, 128 }
  0x37   : > { %v194_v3 = vsel %vm189_vm0, %v193_v2, 0.0  ;;  %p407_p11 = scmp.ne.s32.totalorder %s245_s11, %s406_s26  ;;  %p662_p12 = scmp.ne.s32.totalorder %s656_s24, 0 }
  0x38   : > { %s473_s27 = smov [#allocation5]  }
  0x39   : > { %p408_p13 = pnand %p407_p11, %p662_p12  ;;  %s410_s16 = sshll.u32 %s473_s27, 4  ;;  %s411_s16 = int_to_ptr.vmem [resolvable:$false] %s410_s16 }
  0x3a   : > { %195 = vadd.xlane.f32.xlu0 %v194_v3  ;;  %s412_s28 = scalar_lea.vmem %s411_s16, 256  ;;  %p413_p3 = scmp.lt.s32.totalorder %s245_s11, %s411_s16 }
  0x3b   : > { %p409_p1 = pneg %p408_p13  ;;  %p414_p5 = scmp.lt.s32.totalorder %s412_s28, %s406_s26 }
  0x3d   : > { %p415_p8 = por %p414_p5, %p413_p3 }
  0x3f   : > { %p416_p10 = pnand %p415_p8, %p409_p1 }
  0xbf   : > { %v192_v4 = vpop.xlane.xlu0 %191 }
  0xc0   : > { %v197_v5 = vmul.f32 0.03125, %v192_v4 }
  0xc2   : > { %v198_v6 = vmul.f32 32.0, %v197_v5  ;;  %v213_v18 = vsub.f32 %v186_v0, %v197_v5 }
  0xc3   : > { %v196_v7 = vpop.xlane.xlu0 %195 }
  0xc4   : > { %v199_v8 = vmul.f32 %v198_v6, %v197_v5  ;;  %v220_v20 = vmul.f32 %v322_v19, %v213_v18 }
  0xc6   : > { %v200_v9 = vsub.f32 %v196_v7, %v199_v8 }
  0xc8   : > { %v202_v10 = vmul.f32 0.032258064, %v200_v9 }
  0xca   : > { %v203_v11 = vmax.f32 %v202_v10, 0.0 }
  0xcc   : > { %374 = vrsqrt.f32 %v203_v11  ;;  %vm206_vm1 = vcmp.eq.f32.partialorder %v203_v11, inf  ;;  %v209_v14 = vand.u32 2147483648, %v203_v11  ;;  %vm208_vm2 = vcmp.eq.f32.partialorder %v203_v11, 0.0 }
  0xd9   : > { %v375_v12 = vpop.eup %374 }
  0xda   : > { %v205_v13 = vmul.f32 %v375_v12, %v203_v11 }
  0xdc   : > { %v207_v15 = vsel %vm206_vm1, %v203_v11, %v205_v13 }
  0xdd   : > { %v210_v16 = vsel %vm208_vm2, %v209_v14, %v207_v15 }
  0xde   : > { %v211_v17 = vadd.f32 1e-06, %v210_v16 }
  0xe0   : > { %376 = vrcp.f32 %v211_v17 }
  0xed   : > { %v377_v21 = vpop.eup %376 }
  0xee   : > { %v221_v23 = vmul.f32 %v377_v21, %v220_v20 }
  0xf0   : > { %v228_v24 = vadd.f32 %v323_v22, %v221_v23 }
  0xf2   : > { %229 = vst.msk [vmem:[%s185_s10] sm:$0xff] %vm189_vm0, %v228_v24 }
  0xf3   : > { %419 = shalt.err (!%p416_p10)
}
  0xf4   : > { %s420_s30 = scalar_lea.hbm %s242_s20, 128  ;;  %s424_s7 = scalar_lea.hbm %s651_s3, 256 }
  0xf5   : > { %p421_p2 = scmp.ne.s32.totalorder %s242_s20, %s420_s30  ;;  %p425_p7 = scmp.lt.s32.totalorder %s242_s20, %s651_s3 }
  0xf6   : > { %p426_p0 = scmp.lt.s32.totalorder %s424_s7, %s420_s30 }
  0xf7   : > { %p422_p4 = pnand %p421_p2, %p662_p12 }
  0xf8   : > { %p427_p6 = por %p426_p0, %p425_p7 }
  0xf9   : > { %p423_p9 = pneg %p422_p4 }
  0xfb   : > { %p428_p11 = pnand %p427_p6, %p423_p9 }
  0xfd   : > { %431 = shalt.err (!%p428_p11)
}
  0xfe   : > { %330 = dma.vmem_to_hbm [thread:$0]  (%p662_p12), %s245_s11, 128, %s242_s20, %s231_s22  }
  0xff PF: > { %s256_s6 = sand.u32 1, %s458_s12   ;;  %p663_p13 = scmp.ne.s32.totalorder %s657_s25, 0 }
 0x100   : > { %p664_p1 = scmp.ge.s32.totalorder %s470_s15, 2  ;;  %s257_s8 = scalar_lea.sflag [#allocation4], %s256_s6 }
 0x102   : > { %p337_p3 = pnand %p664_p1, %p663_p13 }
 0x104   : > { %p338_p5 = pneg %p337_p3 }
 0x106   : > { %453 = dma.done.wait (%p338_p5), %s257_s8, 128  }
 0x107   : > { %455 = vsyncadd (%p338_p5), %s257_s8, 4294967168  ;;  %p16_p8 = scmp.ge.s32.totalorder %s519_s18, 4   ;;  %s665_s12 = smov %s462_s13 }
 0x108   : > { %s666_s13 = smov %s466_s14  ;;  %s667_s14 = smov %s531_s21 }
 0x109   : > { %s668_s15 = smov %s519_s18  ;;  %18 = sbr.rel (!%p16_p8) target bundleno = 5 (0x5), region = 77 }
 0x10e   :  { %262 = vsyncpa [#allocation3], 1 }
 0x10f   :  { %264 = vsyncpa [#allocation3 + $0x1], 1 }
 0x110   :  { %265 = vsyncpa [#allocation4], 1 }
 0x111   :  { %267 = vsyncpa [#allocation4 + $0x1], 1 }

</bundles_post_ra>
